<compile_context>
chip_gen: v7x
topology: tpu7x:2x2x1
jax: 0.10.0
libtpu: 0.0.40
codegen_flags: <defaults>
</compile_context>

<pallas_src>
import jax
import jax.numpy as jnp
from jax import lax
from jax.experimental import pallas as pl
from jax.experimental.pallas import tpu as pltpu


def _round_up(v, m):
    return ((v + m - 1) // m) * m


def _sm_kernel(x_ref, w1_ref, w2_ref, bbw_ref, b3_ref, o_ref):
    # x_ref:   (TILE_N, F_in)   natural row-major layout
    # w1_ref:  (D1, F_in)       compute dtype (bf16 by default)
    # w2_ref:  (D1, D1)         compute dtype
    # bbw_ref: (D1, 3) f32      columns = [b1 | b2 | w3]
    # b3_ref:  (1, 1)  f32      SMEM scalar
    # o_ref:   (1, TILE_N) f32  lane-dense output row
    cdt = w1_ref.dtype

    bbw = bbw_ref[...]
    b1 = bbw[:, 0:1]          # (D1, 1)
    b2 = bbw[:, 1:2]          # (D1, 1)
    w3 = bbw[:, 2:3]          # (D1, 1)

    # Layer 1: contract x's feature dim against w1's in-dim, producing the
    # lane-dense (D1, TILE_N) activation directly (no host-side transpose).
    x = x_ref[...].astype(cdt)
    h = lax.dot_general(
        w1_ref[...], x,
        dimension_numbers=(((1,), (1,)), ((), ())),
        preferred_element_type=jnp.float32)
    h = jnp.maximum(h + b1, 0.0)

    # Hidden layer (fc_count = 1): (D1, D1) @ (D1, TILE_N) -> (D1, TILE_N).
    h = jnp.dot(w2_ref[...], h.astype(cdt), preferred_element_type=jnp.float32)
    h = jnp.maximum(h + b2, 0.0)

    # Output layer (D1 -> 1): VPU multiply + sublane (XLU) reduction instead
    # of a width-1 MXU matmul.  Result is a lane-dense (1, TILE_N) row.
    o = jnp.sum(h * w3, axis=0, keepdims=True)
    o_ref[...] = (o + b3_ref[0, 0]).astype(o_ref.dtype)


def sm_forward(x, params, *, tile_n=8192, compute_dtype=jnp.bfloat16):
    """SM forward: x (N, F_in) -> (N,).

    tile_n: max rows per grid step (rounded to a multiple of 128; rows map to
            TPU lanes of the output).  8192 is safe on v5e's 16 MiB scoped
            VMEM; v6e/v7x can go higher.
    compute_dtype: dtype of the MXU matmul *inputs* (bf16 default, f32 for
            strict accuracy).  Accumulation, bias and ReLU are always f32.
    """
    w1, b1, w2, b2, w3, b3 = params
    n, f_in = x.shape
    d1 = w1.shape[0]

    # ---- tile / grid selection -------------------------------------------
    tile = max(128, _round_up(int(tile_n), 128))        # validate tile_n
    # Keep at least 2 grid steps when N allows it (v7x megacore sharding).
    half = max(128, _round_up((n + 1) // 2, 128))
    tile = min(tile, half)
    num_tiles = pl.cdiv(n, tile)
    padded_n = num_tiles * tile                          # output only

    # ---- tiny constant operands (negligible HBM; hoisted/folded under jit) -
    w1c = w1.astype(compute_dtype)
    w2c = w2.astype(compute_dtype)
    bbw = jnp.stack(
        [b1.reshape(-1), b2.reshape(-1), w3.reshape(-1)], axis=1
    ).astype(jnp.float32)                                # (D1, 3)
    b3s = jnp.asarray(b3, jnp.float32).reshape(1, 1)

    out = pl.pallas_call(
        _sm_kernel,
        out_shape=jax.ShapeDtypeStruct((1, padded_n), jnp.float32),
        grid_spec=pl.GridSpec(
            grid=(num_tiles,),
            in_specs=[
                # Only x scales with N: natural layout, tiled along rows.
                # Final block may be ragged; Pallas clips the DMA.
                pl.BlockSpec((tile, f_in), lambda i: (i, 0)),
                # Weights / packed biases: constant index_map -> VMEM-resident.
                pl.BlockSpec((d1, f_in), lambda i: (0, 0)),
                pl.BlockSpec((d1, d1), lambda i: (0, 0)),
                pl.BlockSpec((d1, 3), lambda i: (0, 0)),
                # Scalar output bias: SMEM, not a padded VMEM tile.
                pl.BlockSpec((1, 1), lambda i: (0, 0),
                             memory_space=pltpu.MemorySpace.SMEM),
            ],
            out_specs=pl.BlockSpec((1, tile), lambda i: (0, i)),
        ),
        compiler_params=pltpu.CompilerParams(
            dimension_semantics=("parallel",)),
    )(x, w1c, w2c, bbw, b3s)

    # PyTorch: `if out.shape[1] == 1: return out.view(-1)`; drop pad rows.
    return out[0, :n]


def init_params(key, in_features, dim1=64):
    """Deterministic init matching torch.nn.Linear (weights in (out, in))."""
    k1, k2, k3, k4, k5, k6 = jax.random.split(key, 6)

    def lin(kw, kb, fan_in, fan_out):
        bound = 1.0 / jnp.sqrt(jnp.float32(fan_in))
        w = jax.random.uniform(kw, (fan_out, fan_in), jnp.float32, -bound, bound)
        b = jax.random.uniform(kb, (fan_out,), jnp.float32, -bound, bound)
        return w, b

    w1, b1 = lin(k1, k2, in_features, dim1)     # lin1
    w2, b2 = lin(k3, k4, dim1, dim1)            # lin_list[0] (fc_count = 1)
    w3, b3 = lin(k5, k6, dim1, 1)               # lin2: w3 (1, dim1), b3 (1,)
    return (w1, b1, w2, b2, w3, b3)


def _reference(x, params):
    w1, b1, w2, b2, w3, b3 = params
    h = jnp.maximum(x @ w1.T + b1.reshape(1, -1), 0.0)
    h = jnp.maximum(h @ w2.T + b2.reshape(1, -1), 0.0)
    return (h @ w3.T + b3.reshape(1, -1)).reshape(-1)


if __name__ == "__main__":
    key = jax.random.PRNGKey(0)
    k_x, k_p = jax.random.split(key)

    N = 8            # batch of structures (rows of data.extra_features_SM)
    F_IN = 32        # data[0].extra_features_SM.shape[1]
    DIM1 = 64

    x = jax.random.normal(k_x, (N, F_IN), dtype=jnp.float32)
    params = init_params(k_p, F_IN, DIM1)
    ref = _reference(x, params)

    # f32 compute path (strict correctness check).
    out_f32 = jax.block_until_ready(
        sm_forward(x, params, compute_dtype=jnp.float32))
    assert out_f32.shape == (N,), out_f32.shape
    assert jnp.allclose(out_f32, ref, atol=1e-3, rtol=1e-3), "f32 mismatch vs reference"

    # Default path: bf16 matmul inputs, f32 accumulation (looser tolerance).
    out_bf16 = jax.block_until_ready(sm_forward(x, params))
    assert out_bf16.shape == (N,), out_bf16.shape
    assert jnp.allclose(out_bf16, ref, atol=5e-2, rtol=5e-2), "bf16 mismatch vs reference"

    # Multi-tile path: N not a multiple of the tile -> ragged final block,
    # grid > 1, padded output sliced back to N.  f32 for a strict check.
    N2 = 300
    x2 = jax.random.normal(jax.random.PRNGKey(1), (N2, F_IN), dtype=jnp.float32)
    ref2 = _reference(x2, params)
    out2 = jax.block_until_ready(
        sm_forward(x2, params, tile_n=128, compute_dtype=jnp.float32))
    assert out2.shape == (N2,), out2.shape
    assert jnp.allclose(out2, ref2, atol=1e-3, rtol=1e-3), "tiled mismatch vs reference"

    # Default tile selection on a mid-sized batch (2 grid steps, ragged tail).
    N3 = 1000
    x3 = jax.random.normal(jax.random.PRNGKey(2), (N3, F_IN), dtype=jnp.float32)
    ref3 = _reference(x3, params)
    out3 = jax.block_until_ready(
        sm_forward(x3, params, compute_dtype=jnp.float32))
    assert out3.shape == (N3,), out3.shape
    assert jnp.allclose(out3, ref3, atol=1e-3, rtol=1e-3), "default-tile mismatch vs reference"

    print("KERNEL_OK")
</pallas_src>

<mosaic_0001>
module attributes {stable_mosaic.version = 11 : i64} {
  func.func @_sm_kernel(%arg0: i32, %arg1: memref<128x32xf32, #tpu.memory_space<vmem>>, %arg2: memref<64x32xf32, #tpu.memory_space<vmem>>, %arg3: memref<64x64xf32, #tpu.memory_space<vmem>>, %arg4: memref<64x3xf32, #tpu.memory_space<vmem>>, %arg5: memref<1x1xf32, #tpu.memory_space<smem>>, %arg6: memref<1x128xf32, #tpu.memory_space<vmem>>) attributes {dimension_semantics = [#tpu.dimension_semantics<parallel>], iteration_bounds = array<i64: 1>, scalar_prefetch = 0 : i64, scratch_operands = 0 : i64, tpu.core_type = #tpu.core_type<tc>, window_params = [{transform_indices = @transform_0, window_bounds = array<i64: 128, 32>}, {pipeline_mode = #tpu.pipeline_mode<synchronous>, transform_indices = @transform_1, window_bounds = array<i64: 64, 32>}, {pipeline_mode = #tpu.pipeline_mode<synchronous>, transform_indices = @transform_2, window_bounds = array<i64: 64, 64>}, {pipeline_mode = #tpu.pipeline_mode<synchronous>, transform_indices = @transform_3, window_bounds = array<i64: 64, 3>}, {transform_indices = @transform_4, window_bounds = array<i64: 1, 1>}, {transform_indices = @transform_5, window_bounds = array<i64: 1, 128>}]} {
    %c0 = arith.constant 0 : index
    %c0_0 = arith.constant 0 : index
    %0 = vector.load %arg4[%c0, %c0_0] : memref<64x3xf32, #tpu.memory_space<vmem>>, vector<64x3xf32>
    %1 = vector.extract_strided_slice %0 {offsets = [0, 0], sizes = [64, 1], strides = [1, 1]} : vector<64x3xf32> to vector<64x1xf32>
    %2 = vector.extract_strided_slice %0 {offsets = [0, 1], sizes = [64, 1], strides = [1, 1]} : vector<64x3xf32> to vector<64x1xf32>
    %3 = vector.extract_strided_slice %0 {offsets = [0, 2], sizes = [64, 1], strides = [1, 1]} : vector<64x3xf32> to vector<64x1xf32>
    %c0_1 = arith.constant 0 : index
    %c0_2 = arith.constant 0 : index
    %4 = vector.load %arg1[%c0_1, %c0_2] : memref<128x32xf32, #tpu.memory_space<vmem>>, vector<128x32xf32>
    %c0_3 = arith.constant 0 : index
    %c0_4 = arith.constant 0 : index
    %5 = vector.load %arg2[%c0_3, %c0_4] : memref<64x32xf32, #tpu.memory_space<vmem>>, vector<64x32xf32>
    %cst = arith.constant dense<0.000000e+00> : vector<64x128xf32>
    %6 = tpu.matmul %5, %4, %cst {dimension_numbers = #tpu.dot_dimension_numbers<[1], [1], [0], [0], [0, 0, 1, 0], [], []>} : vector<64x32xf32>, vector<128x32xf32>, vector<64x128xf32> -> vector<64x128xf32>
    %7 = vector.broadcast %1 : vector<64x1xf32> to vector<64x128xf32>
    %8 = arith.addf %6, %7 : vector<64x128xf32>
    %cst_5 = arith.constant 0.000000e+00 : f32
    %9 = vector.broadcast %cst_5 : f32 to vector<64x128xf32>
    %10 = arith.maximumf %8, %9 : vector<64x128xf32>
    %c0_6 = arith.constant 0 : index
    %c0_7 = arith.constant 0 : index
    %11 = vector.load %arg3[%c0_6, %c0_7] : memref<64x64xf32, #tpu.memory_space<vmem>>, vector<64x64xf32>
    %cst_8 = arith.constant dense<0.000000e+00> : vector<64x128xf32>
    %12 = tpu.matmul %11, %10, %cst_8 {dimension_numbers = #tpu.dot_dimension_numbers<[1], [0], [0], [1], [0, 0, 1, 1], [], []>} : vector<64x64xf32>, vector<64x128xf32>, vector<64x128xf32> -> vector<64x128xf32>
    %13 = vector.broadcast %2 : vector<64x1xf32> to vector<64x128xf32>
    %14 = arith.addf %12, %13 : vector<64x128xf32>
    %cst_9 = arith.constant 0.000000e+00 : f32
    %15 = vector.broadcast %cst_9 : f32 to vector<64x128xf32>
    %16 = arith.maximumf %14, %15 : vector<64x128xf32>
    %17 = vector.broadcast %3 : vector<64x1xf32> to vector<64x128xf32>
    %18 = arith.mulf %16, %17 : vector<64x128xf32>
    %cst_10 = arith.constant dense<0.000000e+00> : vector<128xf32>
    %19 = vector.multi_reduction <add>, %18, %cst_10 [0] : vector<64x128xf32> to vector<128xf32>
    %20 = vector.shape_cast %19 : vector<128xf32> to vector<1x128xf32>
    %c0_11 = arith.constant 0 : index
    %c0_12 = arith.constant 0 : index
    %21 = memref.load %arg5[%c0_11, %c0_12] : memref<1x1xf32, #tpu.memory_space<smem>>
    %22 = vector.broadcast %21 : f32 to vector<1x128xf32>
    %23 = arith.addf %20, %22 : vector<1x128xf32>
    %c0_13 = arith.constant 0 : index
    %c0_14 = arith.constant 0 : index
    %24 = vector.load %arg6[%c0_13, %c0_14] : memref<1x128xf32, #tpu.memory_space<vmem>>, vector<1x128xf32>
    tpu.vector_store %arg6[%c0_13, %c0_14], %23 {strides = array<i32>} : memref<1x128xf32, #tpu.memory_space<vmem>>, vector<1x128xf32>,
    return
  }
  func.func @transform_0(%arg0: i32) -> (i32, i32) {
    %c0_i32 = arith.constant 0 : i32
    %c0_i32_0 = arith.constant 0 : i32
    return %arg0, %c0_i32 : i32, i32
  }
  func.func @transform_1(%arg0: i32) -> (i32, i32) {
    %c0_i32 = arith.constant 0 : i32
    %c0_i32_0 = arith.constant 0 : i32
    %c0_i32_1 = arith.constant 0 : i32
    return %c0_i32, %c0_i32_0 : i32, i32
  }
  func.func @transform_2(%arg0: i32) -> (i32, i32) {
    %c0_i32 = arith.constant 0 : i32
    %c0_i32_0 = arith.constant 0 : i32
    %c0_i32_1 = arith.constant 0 : i32
    return %c0_i32, %c0_i32_0 : i32, i32
  }
  func.func @transform_3(%arg0: i32) -> (i32, i32) {
    %c0_i32 = arith.constant 0 : i32
    %c0_i32_0 = arith.constant 0 : i32
    %c0_i32_1 = arith.constant 0 : i32
    return %c0_i32, %c0_i32_0 : i32, i32
  }
  func.func @transform_4(%arg0: i32) -> (i32, i32) {
    %c0_i32 = arith.constant 0 : i32
    %c0_i32_0 = arith.constant 0 : i32
    %c0_i32_1 = arith.constant 0 : i32
    return %c0_i32, %c0_i32_0 : i32, i32
  }
  func.func @transform_5(%arg0: i32) -> (i32, i32) {
    %c0_i32 = arith.constant 0 : i32
    %c0_i32_0 = arith.constant 0 : i32
    return %c0_i32, %arg0 : i32, i32
  }
}

</mosaic_0001>

<bundles_post_ra>
// kernel: tpu_custom_call.1
= control target key start
LH: loop header
LB: loop body
LE: loop exit
PB: predicated region body
PF: predicated region fallthrough
CT: control target
= control target key end

     0   :  { %vm94_vm0 = vcmask 261120   ;;  %v776_v6 = vmov 0   ;;  %s1034_s0 = inlined_call_operand.vmem [shape: f32[8,32], index: 0, kind: input, shape index: {}]   ;;  %s1035_s1 = inlined_call_operand.vmem [shape: f32[64,32], index: 1, kind: input, shape index: {}]   ;;  %s1036_s2 = inlined_call_operand.vmem [shape: f32[64,64], index: 2, kind: input, shape index: {}]   ;;  %s1037_s3 = inlined_call_operand.vmem [shape: f32[64,3], index: 3, kind: input, shape index: {}]   ;;  %s1038_s4 = inlined_call_operand.<no memory space> [shape: f32[1,1], index: 4, kind: input, shape index: {}]   ;;  %s1039_s5 = inlined_call_operand.hbm [shape: f32[1,128], index: 5, kind: output, shape index: {}]  }
   0x1   :  { %v30_v0 = vld [vmem:[%s1034_s0] sm:$0xff]  ;;  %v31_v1 = vld [vmem:[%s1034_s0 + $0x8] sm:$0xff]  ;;  %v32_v2 = vld [vmem:[%s1034_s0 + $0x10] sm:$0xff]  ;;  %741 = vset.pattern.permute.xlu0 %v776_v6  ;;  %742 = vset.pattern.permute.xlu1 %v776_v6 }
   0x2   :  { %v673_v3 = vpack.c.bf16 %v31_v1, %v30_v0  ;;  %vm821_vm1 = vmpackc.low %vm94_vm0, %vm94_vm0  ;;  %v33_v5 = vld [vmem:[%s1034_s0 + $0x18] sm:$0xff]  ;;  %v46_v8 = vld [vmem:[%s1035_s1] sm:$0xff] }
   0x3   :  { %v679_v7 = vpack.c.bf16 %v33_v5, %v32_v2  ;;  %v34_v9 = vld [vmem:[%s1034_s0 + $0x20] sm:$0xff]  ;;  %v35_v10 = vld [vmem:[%s1034_s0 + $0x28] sm:$0xff]  ;;  %633 = vmatprep.mubr.msk.f32.mxu0 %vm94_vm0, %v46_v8  ;;  %v852_v12 = vld [vmem:[%s1037_s3 + $0x10] sm:$0xff] }
   0x4   :  { %675 = vmatprep.subr.msk.bf16.mxu0 %vm821_vm1, %v673_v3  ;;  %v847_v11 = vld [vmem:[%s1037_s3] sm:$0xff]  ;;  %v685_v13 = vpack.c.bf16 %v35_v10, %v34_v9  ;;  %66 = vperm.xlu1 %742, %v852_v12   ;;  %v23_v14 = vld [vmem:[%s1037_s3 + $0x8] sm:$0xff]  ;;  %v862_v15 = vld [vmem:[%s1037_s3 + $0x18] sm:$0xff] }
   0x5   :  { %678 = vmatpush3.bf16.xpose.msk.msra.mxu0 %vm821_vm1, %v673_v3  ;;  %56 = vperm.xlu0 %741, %v847_v11  }
   0x6   :  { %681 = vmatprep.subr.msk.bf16.mxu0 %vm821_vm1, %v679_v7 }
   0x7   :  { %11 = vsyncpa [#allocation4], 0  ;;  %v36_v16 = vld [vmem:[%s1034_s0 + $0x30] sm:$0xff]  ;;  %v37_v17 = vld [vmem:[%s1034_s0 + $0x38] sm:$0xff]  ;;  %vm320_vm2 = vcmask 523264   ;;  %v777_v43 = vmov 1  }
   0x8   :  { %71 = vperm.xlu1 %742, %v862_v15   ;;  %v878_v18 = vld [vmem:[%s1037_s3 + $0x20] sm:$0xff]  ;;  %v883_v19 = vld [vmem:[%s1037_s3 + $0x28] sm:$0xff]  ;;  %v691_v20 = vpack.c.bf16 %v37_v17, %v36_v16  ;;  %v890_v21 = vld [vmem:[%s1037_s3 + $0x30] sm:$0xff]  ;;  %v778_v44 = vmov 2   ;;  %s779_s20 = smov [#allocation3]  }
   0x9   :  { %61 = vperm.xlu0 %741, %v23_v14   ;;  %v895_v22 = vld [vmem:[%s1037_s3 + $0x38] sm:$0xff]  ;;  %v38_v23 = vld [vmem:[%s1034_s0 + $0x40] sm:$0xff]  ;;  %v39_v24 = vld [vmem:[%s1034_s0 + $0x48] sm:$0xff] }
   0xa   :  { %v697_v25 = vpack.c.bf16 %v39_v24, %v38_v23  ;;  %v40_v26 = vld [vmem:[%s1034_s0 + $0x50] sm:$0xff]  ;;  %v41_v27 = vld [vmem:[%s1034_s0 + $0x58] sm:$0xff]  ;;  %v42_v29 = vld [vmem:[%s1034_s0 + $0x60] sm:$0xff] }
   0xb   :  { %v703_v28 = vpack.c.bf16 %v41_v27, %v40_v26  ;;  %v43_v30 = vld [vmem:[%s1034_s0 + $0x68] sm:$0xff]  ;;  %v44_v32 = vld [vmem:[%s1034_s0 + $0x70] sm:$0xff]  ;;  %v45_v33 = vld [vmem:[%s1034_s0 + $0x78] sm:$0xff]  ;;  %s521_s0 = sshll.u32 %s779_s20, 4  ;;  %s522_s0 = int_to_ptr.vmem [resolvable:$true] %s521_s0 }
   0xc   :  { %81 = vperm.xlu1 %742, %v883_v19   ;;  %v709_v31 = vpack.c.bf16 %v43_v30, %v42_v29  ;;  %v715_v34 = vpack.c.bf16 %v45_v33, %v44_v32  ;;  %v47_v35 = vld [vmem:[%s1035_s1 + $0x8] sm:$0xff]  ;;  %v48_v36 = vld [vmem:[%s1035_s1 + $0x10] sm:$0xff]  ;;  %v49_v37 = vld [vmem:[%s1035_s1 + $0x18] sm:$0xff]  ;;  %s752_s21 = scalar_lea.vmem %s522_s0, 16  ;;  %s756_s22 = scalar_lea.vmem %s522_s0, 32 }
   0xd   :  { %684 = vmatpush3.bf16.xpose.msk.msra.mxu0 %vm821_vm1, %v679_v7  ;;  %76 = vperm.xlu0 %741, %v878_v18   ;;  %v50_v38 = vld [vmem:[%s1035_s1 + $0x20] sm:$0xff]  ;;  %v51_v39 = vld [vmem:[%s1035_s1 + $0x28] sm:$0xff]  ;;  %v52_v40 = vld [vmem:[%s1035_s1 + $0x30] sm:$0xff]  ;;  %p753_p0 = scmp.ne.s32.totalorder %s522_s0, %s752_s21  ;;  %p757_p1 = scmp.lt.s32.totalorder %s522_s0, %s522_s0 }
   0xe   :  { %687 = vmatprep.subr.msk.bf16.mxu0 %vm821_vm1, %v685_v13  ;;  %v53_v41 = vld [vmem:[%s1035_s1 + $0x38] sm:$0xff]  ;;  %v280_v42 = vld [vmem:[%s1036_s2] sm:$0xff]  ;;  %v281_v17 = vld [vmem:[%s1036_s2 + $0x8] sm:$0xff]  ;;  %p758_p2 = scmp.lt.s32.totalorder %s756_s22, %s752_s21 }
   0xf   :  { %661 = vmatprep.mubr.msk.f32.mxu1 %vm320_vm2, %v280_v42  ;;  %v287_v23 = vld [vmem:[%s1036_s2 + $0x38] sm:$0xff] }
  0x10   :  { %91 = vperm.xlu1 %742, %v895_v22   ;;  %p759_p3 = por %p758_p2, %p757_p1 }
  0x11   :  { %86 = vperm.xlu0 %741, %v890_v21  }
  0x12   :  { %p760_p4 = pnand %p759_p3, %p753_p0 }
  0x14   :  { %743 = vset.pattern.permute.xlu1 %v777_v43 }
  0x15   :  { %690 = vmatpush3.bf16.xpose.msk.msra.mxu0 %vm821_vm1, %v685_v13  ;;  %745 = vset.pattern.permute.xlu0 %v778_v44 }
  0x16   :  { %693 = vmatprep.subr.msk.bf16.mxu0 %vm821_vm1, %v691_v20  ;;  %293 = vperm.xlu1 %743, %v23_v14  }
  0x17   :  { %463 = vperm.xlu0 %745, %v23_v14  }
  0x1a   :  { %297 = vperm.xlu1 %743, %v852_v12  }
  0x1b   :  { %746 = vset.pattern.permute.xlu0 %v777_v43 }
  0x1c   :  { %289 = vperm.xlu0 %746, %v847_v11  }
  0x1d   :  { %696 = vmatpush3.bf16.xpose.msk.msra.mxu0 %vm821_vm1, %v691_v20  ;;  %v284_v20 = vld [vmem:[%s1036_s2 + $0x20] sm:$0xff] }
  0x1e   :  { %699 = vmatprep.subr.msk.bf16.mxu0 %vm821_vm1, %v697_v25  ;;  %744 = vset.pattern.permute.xlu1 %v778_v44 }
  0x1f   :  { %459 = vperm.xlu1 %744, %v847_v11  }
  0x20   :  { %301 = vperm.xlu0 %746, %v862_v15  }
  0x23   :  { %747 = vset.pattern.permute.xlu1 %v777_v43 }
  0x24   :  { %309 = vperm.xlu0 %746, %v883_v19   ;;  %305 = vperm.xlu1 %747, %v878_v18  }
  0x25   :  { %702 = vmatpush3.bf16.xpose.msk.msra.mxu0 %vm821_vm1, %v697_v25 }
  0x26   :  { %705 = vmatprep.subr.msk.bf16.mxu0 %vm821_vm1, %v703_v28 }
  0x28   :  { %750 = vset.pattern.permute.xlu0 %v778_v44  ;;  %748 = vset.pattern.permute.xlu1 %v778_v44 }
  0x29   :  { %475 = vperm.xlu0 %750, %v878_v18   ;;  %467 = vperm.xlu1 %748, %v852_v12   ;;  %v282_v18 = vld [vmem:[%s1036_s2 + $0x10] sm:$0xff] }
  0x2d   :  { %708 = vmatpush3.bf16.xpose.msk.msra.mxu0 %vm821_vm1, %v703_v28  ;;  %483 = vperm.xlu0 %750, %v890_v21  }
  0x2e   :  { %711 = vmatprep.subr.msk.bf16.mxu0 %vm821_vm1, %v709_v31  ;;  %471 = vperm.xlu1 %748, %v862_v15  }
  0x32   :  { %749 = vset.pattern.permute.xlu1 %v777_v43 }
  0x33   :  { %313 = vperm.xlu1 %749, %v890_v21   ;;  %v285_v21 = vld [vmem:[%s1036_s2 + $0x28] sm:$0xff] }
  0x35   :  { %714 = vmatpush3.bf16.xpose.msk.msra.mxu0 %vm821_vm1, %v709_v31 }
  0x36   :  { %717 = vmatprep.subr.msk.bf16.mxu0 %vm821_vm1, %v715_v34 }
  0x37   :  { %317 = vperm.xlu1 %749, %v895_v22  }
  0x3b   :  { %751 = vset.pattern.permute.xlu1 %v778_v44 }
  0x3c   :  { %479 = vperm.xlu1 %751, %v883_v19   ;;  %v283_v19 = vld [vmem:[%s1036_s2 + $0x18] sm:$0xff] }
  0x3d   :  { %720 = vmatpush3.bf16.xpose.msk.msra.mxu0 %vm821_vm1, %v715_v34 }
  0x40   :  { %487 = vperm.xlu1 %751, %v895_v22   ;;  %v286_v22 = vld [vmem:[%s1036_s2 + $0x30] sm:$0xff] }
  0x44   :  { %634 = vmatmul.mubr.msk.f32.vlgmr.msra.gmra.mrb[0].mxu0 %vm94_vm0, %v47_v35 }
  0x45   :  { %636 = vmatprep.mubr.msk.f32.mxu0 %vm94_vm0, %v48_v36 }
  0x48   :  { %637 = vmatmul.mubr.msk.f32.gmra.mrb[2].mxu0 %vm94_vm0, %v49_v37 }
  0x49   :  { %639 = vmatprep.mubr.msk.f32.mxu0 %vm94_vm0, %v50_v38 }
  0x4c   :  { %640 = vmatmul.mubr.msk.f32.gmra.mrb[4].mxu0 %vm94_vm0, %v51_v39 }
  0x4d   :  { %642 = vmatprep.mubr.msk.f32.mxu0 %vm94_vm0, %v52_v40 }
  0x50   :  { %643 = vmatmul.mubr.msk.f32.gmra.mrb[6].mxu0 %vm94_vm0, %v53_v41 }
  0x83   :  { %v67_v46 = vpop.permute.xlu1 %66 }
  0x84   :  { %v57_v45 = vpop.permute.xlu0 %56 }
  0x87   :  { %v72_v48 = vpop.permute.xlu1 %71 }
  0x88   :  { %v62_v47 = vpop.permute.xlu0 %61 }
  0x8b   :  { %v82_v58 = vpop.permute.xlu1 %81 }
  0x8c   :  { %v77_v61 = vpop.permute.xlu0 %76 }
  0x8f   :  { %v92_v6 = vpop.permute.xlu1 %91 }
  0x90   :  { %v87_v9 = vpop.permute.xlu0 %86 }
  0x95   :  { %v294_v24 = vpop.permute.xlu1 %293 }
  0x96   :  { %v464_v29 = vpop.permute.xlu0 %463 }
  0x99   :  { %v298_v25 = vpop.permute.xlu1 %297 }
  0x9b   :  { %v290_v31 = vpop.permute.xlu0 %289 }
  0x9e   :  { %v460_v26 = vpop.permute.xlu1 %459 }
  0x9f   :  { %v302_v34 = vpop.permute.xlu0 %301 }
  0xa3   :  { %v306_v27 = vpop.permute.xlu1 %305 }
  0xa8   :  { %v468_v28 = vpop.permute.xlu1 %467 }
  0xad   :  { %v472_v30 = vpop.permute.xlu1 %471 }
  0xb2   :  { %v314_v32 = vpop.permute.xlu1 %313 }
  0xb6   :  { %v318_v44 = vpop.permute.xlu1 %317 }
 0x117   :  { %v635_v49 = vpop.f32.mrb[0].mxu0 }
 0x118   :  { %v239_v50 = vadd.f32 %v635_v49, %v62_v47  ;;  %v233_v51 = vpop.f32.mrb[1].mxu0  ;;  %v310_v47 = vpop.permute.xlu0 %309 }
 0x119   :  { %v234_v52 = vadd.f32 %v233_v51, %v57_v45 }
 0x11a   :  { %v273_v53 = vmax.f32 %v239_v50, 0.0 }
 0x11b   :  { %v272_v54 = vmax.f32 %v234_v52, 0.0  ;;  %v638_v55 = vpop.f32.mrb[2].mxu0 }
 0x11c   :  { %v249_v56 = vadd.f32 %v638_v55, %v72_v48  ;;  %v243_v57 = vpop.f32.mrb[3].mxu0 }
 0x11d   :  { %v244_v59 = vadd.f32 %v243_v57, %v67_v46  ;;  %v721_v60 = vpack.c.bf16 %v273_v53, %v272_v54  ;;  %v480_v57 = vpop.permute.xlu1 %479 }
 0x11e   :  { %v275_v62 = vmax.f32 %v249_v56, 0.0  ;;  %v476_v56 = vpop.permute.xlu0 %475 }
 0x11f   :  { %v274_v63 = vmax.f32 %v244_v59, 0.0  ;;  %v641_v0 = vpop.f32.mrb[4].mxu0  ;;  %722 = vmatprep.subr.bf16.mxu1 %v721_v60 }
 0x120   :  { %v259_v1 = vadd.f32 %v641_v0, %v82_v58  ;;  %v253_v2 = vpop.f32.mrb[5].mxu0  ;;  %724 = vmatpush3.bf16.msra.mxu1 %v721_v60 }
 0x121   :  { %v725_v3 = vpack.c.bf16 %v275_v62, %v274_v63  ;;  %v254_v4 = vadd.f32 %v253_v2, %v77_v61 }
 0x122   :  { %v277_v5 = vmax.f32 %v259_v1, 0.0 }
 0x123   :  { %v276_v7 = vmax.f32 %v254_v4, 0.0  ;;  %v644_v8 = vpop.f32.mrb[6].mxu0  ;;  %726 = vmatprep.subr.bf16.mxu1 %v725_v3 }
 0x124   :  { %v269_v10 = vadd.f32 %v644_v8, %v92_v6  ;;  %v263_v11 = vpop.f32.mrb[7].mxu0  ;;  %728 = vmatpush3.bf16.msra.mxu1 %v725_v3  ;;  %v484_v8 = vpop.permute.xlu0 %483 }
 0x125   :  { %v729_v12 = vpack.c.bf16 %v277_v5, %v276_v7  ;;  %v264_v13 = vadd.f32 %v263_v11, %v87_v9  ;;  %v488_v9 = vpop.permute.xlu1 %487 }
 0x126   :  { %v279_v14 = vmax.f32 %v269_v10, 0.0 }
 0x127   :  { %v278_v15 = vmax.f32 %v264_v13, 0.0  ;;  %730 = vmatprep.subr.bf16.mxu1 %v729_v12 }
 0x128   :  { %732 = vmatpush3.bf16.msra.mxu1 %v729_v12 }
 0x129   :  { %v733_v16 = vpack.c.bf16 %v279_v14, %v278_v15 }
 0x12b   :  { %734 = vmatprep.subr.bf16.mxu1 %v733_v16 }
 0x12c   :  { %736 = vmatpush3.bf16.msra.mxu1 %v733_v16 }
 0x12f   :  { %662 = vmatmul.mubr.msk.f32.vlgmr.msra.gmra.mrb[0].mxu1 %vm320_vm2, %v281_v17 }
 0x130   :  { %664 = vmatprep.mubr.msk.f32.mxu1 %vm320_vm2, %v282_v18 }
 0x133   :  { %665 = vmatmul.mubr.msk.f32.gmra.mrb[2].mxu1 %vm320_vm2, %v283_v19 }
 0x134   :  { %667 = vmatprep.mubr.msk.f32.mxu1 %vm320_vm2, %v284_v20  ;;  %v512_v20 = vstv %s1038_s4 }
 0x137   :  { %668 = vmatmul.mubr.msk.f32.gmra.mrb[4].mxu1 %vm320_vm2, %v285_v21 }
 0x138   :  { %670 = vmatprep.mubr.msk.f32.mxu1 %vm320_vm2, %v286_v22 }
 0x13b   :  { %671 = vmatmul.mubr.msk.f32.gmra.mrb[6].mxu1 %vm320_vm2, %v287_v23 }
 0x202   :  { %v663_v33 = vpop.f32.mrb[0].mxu1 }
 0x203   :  { %v417_v35 = vadd.f32 %v663_v33, %v294_v24  ;;  %v411_v36 = vpop.f32.mrb[1].mxu1 }
 0x204   :  { %v412_v37 = vadd.f32 %v411_v36, %v290_v31 }
 0x205   :  { %v451_v38 = vmax.f32 %v417_v35, 0.0 }
 0x206   :  { %v450_v39 = vmax.f32 %v412_v37, 0.0  ;;  %v666_v40 = vpop.f32.mrb[2].mxu1 }
 0x207   :  { %v491_v41 = vmul.f32 %v464_v29, %v451_v38  ;;  %v427_v42 = vadd.f32 %v666_v40, %v302_v34  ;;  %v421_v43 = vpop.f32.mrb[3].mxu1 }
 0x208   :  { %v490_v45 = vmul.f32 %v460_v26, %v450_v39  ;;  %v422_v46 = vadd.f32 %v421_v43, %v298_v25 }
 0x209   :  { %v453_v49 = vmax.f32 %v427_v42, 0.0 }
 0x20a   :  { %v498_v48 = vadd.f32 %v491_v41, %v490_v45  ;;  %v452_v50 = vmax.f32 %v422_v46, 0.0  ;;  %v669_v51 = vpop.f32.mrb[4].mxu1 }
 0x20b   :  { %v437_v52 = vadd.f32 %v669_v51, %v310_v47  ;;  %v431_v53 = vpop.f32.mrb[5].mxu1  ;;  %v493_v58 = vmul.f32 %v472_v30, %v453_v49 }
 0x20c   :  { %v492_v54 = vmul.f32 %v468_v28, %v452_v50  ;;  %v432_v55 = vadd.f32 %v431_v53, %v306_v27 }
 0x20d   :  { %v455_v60 = vmax.f32 %v437_v52, 0.0 }
 0x20e   :  { %v499_v59 = vadd.f32 %v498_v48, %v492_v54  ;;  %v454_v61 = vmax.f32 %v432_v55, 0.0  ;;  %v672_v62 = vpop.f32.mrb[6].mxu1 }
 0x20f   :  { %v447_v63 = vadd.f32 %v672_v62, %v318_v44  ;;  %v441_v0 = vpop.f32.mrb[7].mxu1  ;;  %v495_v5 = vmul.f32 %v480_v57, %v455_v60 }
 0x210   :  { %v500_v1 = vadd.f32 %v499_v59, %v493_v58  ;;  %v494_v2 = vmul.f32 %v476_v56, %v454_v61  ;;  %v442_v3 = vadd.f32 %v441_v0, %v314_v32 }
 0x211   :  { %v457_v6 = vmax.f32 %v447_v63, 0.0 }
 0x212   :  { %v501_v4 = vadd.f32 %v500_v1, %v494_v2  ;;  %v456_v7 = vmax.f32 %v442_v3, 0.0 }
 0x213   :  { %v497_v13 = vmul.f32 %v488_v9, %v457_v6 }
 0x214   :  { %v502_v10 = vadd.f32 %v501_v4, %v495_v5  ;;  %v496_v11 = vmul.f32 %v484_v8, %v456_v7 }
 0x216   :  { %v503_v12 = vadd.f32 %v502_v10, %v496_v11 }
 0x218   :  { %v504_v14 = vadd.f32 %v503_v12, %v497_v13 }
 0x21a   :  { %v505_v15 = vrot.slane %v504_v14, 4 }
 0x21c   :  { %v506_v16 = vadd.f32 %v505_v15, %v504_v14 }
 0x21e   :  { %v507_v17 = vrot.slane %v506_v16, 2 }
 0x220   :  { %v508_v18 = vadd.f32 %v507_v17, %v506_v16 }
 0x222   :  { %v509_v19 = vrot.slane %v508_v18, 1 }
 0x224   :  { %v510_v21 = vadd.f32 %v509_v19, %v508_v18 }
 0x226   :  { %v513_v22 = vadd.f32 %v512_v20, %v510_v21 }
 0x228   :  { %514 = vst [vmem:[#allocation3] sm:$0x1] %v513_v22 }
 0x229   :  { %763 = shalt.err (!%p760_p4)
}
 0x22a   :  { %s764_s25 = scalar_lea.hbm %s1039_s5, 16 }
 0x22b   :  { %p765_p5 = scmp.ne.s32.totalorder %s1039_s5, %s764_s25  ;;  %p768_p6 = scmp.lt.u32.totalorder %s764_s25, %s1039_s5 }
 0x22d   :  { %p770_p7 = pnand %p768_p6, %p765_p5 }
 0x22f   :  { %773 = shalt.err (!%p770_p7)
}
 0x230   :  { %524 = dma.vmem_to_hbm [thread:$0]  %s522_s0, 16, %s1039_s5, [#allocation4]  }
 0x231   :  { %774 = dma.done.wait [#allocation4], 16  }
 0x232   :  { %775 = vsyncadd [#allocation4], 4294967280 }
 0x233   :  { %528 = vsyncpa [#allocation4], 1 }

</bundles_post_ra>
